<compile_context>
chip_gen: v6e
topology: v6e:2x2x1
jax: 0.10.0
libtpu: 0.0.40
codegen_flags: <defaults>
</compile_context>

<pallas_src>
import math
import functools

import jax
import jax.numpy as jnp
from jax.experimental import pallas as pl
from jax.experimental.pallas import tpu as pltpu


def _round_up(x, m):
    return ((x + m - 1) // m) * m


def _vmem_budget_bytes():
    cap = 128 * 1024 * 1024
    try:
        info = pltpu.get_tpu_info()
        cap = int(getattr(info, "vmem_capacity_bytes", cap))
    except Exception:
        pass
    # leave headroom for compiler-internal scratch:
    #   64 MiB part (v7x)  -> 56 MiB budget
    #   128 MiB part (v5e/v6e) -> 112 MiB budget
    return min((cap * 7) // 8, cap - (8 << 20))


# ---------------------------------------------------------------------------
# Kernels
# ---------------------------------------------------------------------------

def _ln_epilogue(h, g, beta, o_ref, eps, n_valid):
    """Fused residual-LayerNorm epilogue on an f32 (tm, N_pad) tile (one-pass stats)."""
    n_pad = h.shape[-1]
    inv_n = 1.0 / float(n_valid)
    if n_pad == n_valid:
        hz = h
    else:
        # Lane dim is padded to a multiple of 128: exclude padded lanes from LN stats.
        lane = jax.lax.broadcasted_iota(jnp.int32, h.shape, dimension=1)
        hz = jnp.where(lane < n_valid, h, 0.0)
    s1 = jnp.sum(hz, axis=-1, keepdims=True)
    s2 = jnp.sum(hz * hz, axis=-1, keepdims=True)
    mean = s1 * inv_n
    var = jnp.maximum(s2 * inv_n - mean * mean, 0.0)
    scale = g * jax.lax.rsqrt(var + eps)          # fused gamma * rsqrt
    o_ref[...] = ((hz - mean) * scale + beta).astype(o_ref.dtype)


def self_output_kernel_single(x_ref, w_ref, b_ref, res_ref, g_ref, beta_ref, o_ref,
                              *, eps, n_valid, matmul_dtype):
    """Resident-weight path: one K step per row tile, no accumulator scratch."""
    h = jnp.dot(x_ref[...].astype(matmul_dtype), w_ref[...],
                preferred_element_type=jnp.float32)
    h = h + b_ref[...] + res_ref[...].astype(jnp.float32)
    _ln_epilogue(h, g_ref[...], beta_ref[...], o_ref, eps, n_valid)


def self_output_kernel_kacc(x_ref, w_ref, b_ref, res_ref, g_ref, beta_ref, o_ref, acc_ref,
                            *, eps, n_valid, matmul_dtype):
    """K-tiled path with f32 VMEM accumulator (P3 pattern)."""
    k = pl.program_id(1)

    @pl.when(k == 0)
    def _init():
        acc_ref[...] = jnp.zeros_like(acc_ref)

    acc_ref[...] += jnp.dot(x_ref[...].astype(matmul_dtype), w_ref[...],
                            preferred_element_type=jnp.float32)

    @pl.when(k == pl.num_programs(1) - 1)
    def _epilogue():
        h = acc_ref[...] + b_ref[...] + res_ref[...].astype(jnp.float32)
        _ln_epilogue(h, g_ref[...], beta_ref[...], o_ref, eps, n_valid)


# ---------------------------------------------------------------------------
# Planning + parameter preparation (hoisted out of the per-call path)
# ---------------------------------------------------------------------------

def prepare_self_output_params(weight_t, bias, gamma, beta,
                               *, matmul_dtype=jnp.bfloat16, vmem_limit_bytes=None):
    """weight_t: [insize, outsize] (transpose of torch nn.Linear.weight).
    Pads + casts the parameters once; callers should cache the returned dict."""
    insize, outsize = weight_t.shape
    N_pad = _round_up(outsize, 128)
    vmem_limit = vmem_limit_bytes if vmem_limit_bytes is not None else _vmem_budget_bytes()
    w_itemsize = jnp.dtype(matmul_dtype).itemsize

    # Weight residency: if the (double-buffered) full weight fits ~1/3 of the budget,
    # keep it resident (constant block index -> DMA'd once for the whole kernel).
    if 2 * insize * N_pad * w_itemsize <= vmem_limit // 3:
        tk, K_pad, resident = insize, insize, True
    else:
        K128 = _round_up(insize, 128)
        tk = 128
        for cand in range(2048, 127, -128):       # largest lane-aligned tk dividing K128
            if K128 % cand == 0:
                tk = cand
                break
        K_pad, resident = K128, False

    w_p = weight_t
    if K_pad > insize or N_pad > outsize:
        w_p = jnp.pad(w_p, ((0, K_pad - insize), (0, N_pad - outsize)))
    w_p = w_p.astype(matmul_dtype)

    b2d = jnp.pad(bias.astype(jnp.float32), (0, N_pad - outsize)).reshape(1, N_pad)
    g2d = jnp.pad(gamma.astype(jnp.float32), (0, N_pad - outsize)).reshape(1, N_pad)
    be2d = jnp.pad(beta.astype(jnp.float32), (0, N_pad - outsize)).reshape(1, N_pad)

    return dict(w=w_p, b=b2d, g=g2d, beta=be2d,
                insize=insize, outsize=outsize,
                K_pad=K_pad, N_pad=N_pad, tk=tk, resident=resident,
                matmul_dtype=matmul_dtype, vmem_limit=vmem_limit)


def _plan_tm(M, tk, N_pad, x_bytes, res_bytes, out_bytes, vmem_limit, single_k):
    M8 = _round_up(M, 8)
    budget = int(vmem_limit * 0.9)

    def fits(tm):
        fp = 2 * tm * tk * x_bytes              # x tiles (double-buffered)
        fp += 2 * tm * N_pad * res_bytes        # residual tiles
        fp += 2 * tm * N_pad * out_bytes        # output tiles
        fp += 2 * tk * N_pad * 2                # bf16 weight slice (double-buffered)
        if not single_k:
            fp += tm * N_pad * 4                # f32 accumulator scratch
        fp += 8 * N_pad * 4                     # bias / gamma / beta
        return fp <= budget

    tm = 8
    for cand in (1024, 512, 256, 128, 64, 32, 16, 8):
        if cand <= M8 and fits(cand):
            tm = cand
            break
    # Megacore: keep at least 2 row tiles so both v7x TensorCores get work.
    if tm >= 512 and M8 // tm < 2:
        tm //= 2
    return tm


# ---------------------------------------------------------------------------
# Forward pass
# ---------------------------------------------------------------------------

def transformer_self_output(hidden_states, input_tensor, params, *, eps=1e-5):
    """hidden_states: [B, S, insize], input_tensor: [B, S, outsize].
    params: output of prepare_self_output_params. eps should match the torch model
    (nn.LayerNorm default 1e-5; BERT configs often use 1e-12)."""
    orig_dtype = hidden_states.dtype
    B, S, insize = hidden_states.shape
    outsize = params["outsize"]
    assert insize == params["insize"]

    K_pad, N_pad, tk = params["K_pad"], params["N_pad"], params["tk"]
    matmul_dtype = params["matmul_dtype"]
    vmem_limit = params["vmem_limit"]
    single_k = (K_pad == tk)

    M = B * S
    x2d = hidden_states.reshape(M, insize)
    r2d = input_tensor.reshape(M, outsize)

    x_bytes = jnp.dtype(x2d.dtype).itemsize
    res_bytes = jnp.dtype(r2d.dtype).itemsize
    out_bytes = jnp.dtype(orig_dtype).itemsize
    tm = _plan_tm(M, tk, N_pad, x_bytes, res_bytes, out_bytes, vmem_limit, single_k)
    M_pad = _round_up(M, tm)

    # Pad only when actually needed (activations stay in their original dtype; the
    # kernel casts the x tile to bf16 right before the MXU op).
    if M_pad > M or K_pad > insize:
        x2d = jnp.pad(x2d, ((0, M_pad - M), (0, K_pad - insize)))
    if M_pad > M or N_pad > outsize:
        r2d = jnp.pad(r2d, ((0, M_pad - M), (0, N_pad - outsize)))

    n_row_tiles = M_pad // tm
    n_k_tiles = K_pad // tk

    itemsize = lambda d: jnp.dtype(d).itemsize
    w_reads = 1 if params["resident"] else n_row_tiles
    cost = pl.CostEstimate(
        flops=2 * M_pad * K_pad * N_pad,
        transcendentals=0,
        bytes_accessed=(x2d.size * itemsize(x2d.dtype)
                        + w_reads * params["w"].size * itemsize(matmul_dtype)
                        + r2d.size * itemsize(r2d.dtype)
                        + M_pad * N_pad * itemsize(orig_dtype)),
    )

    if single_k:
        kernel = functools.partial(self_output_kernel_single, eps=eps,
                                   n_valid=outsize, matmul_dtype=matmul_dtype)
        grid = (n_row_tiles,)
        in_specs = [
            pl.BlockSpec((tm, K_pad), lambda i: (i, 0)),        # x tile
            pl.BlockSpec((K_pad, N_pad), lambda i: (0, 0)),     # resident weight
            pl.BlockSpec((1, N_pad), lambda i: (0, 0)),         # bias
            pl.BlockSpec((tm, N_pad), lambda i: (i, 0)),        # residual tile
            pl.BlockSpec((1, N_pad), lambda i: (0, 0)),         # gamma
            pl.BlockSpec((1, N_pad), lambda i: (0, 0)),         # beta
        ]
        out_specs = pl.BlockSpec((tm, N_pad), lambda i: (i, 0))
        scratch_shapes = []
        dim_sem = ("parallel",)
    else:
        kernel = functools.partial(self_output_kernel_kacc, eps=eps,
                                   n_valid=outsize, matmul_dtype=matmul_dtype)
        grid = (n_row_tiles, n_k_tiles)
        in_specs = [
            pl.BlockSpec((tm, tk), lambda i, k: (i, k)),        # x tile
            pl.BlockSpec((tk, N_pad), lambda i, k: (k, 0)),     # weight K-slice
            pl.BlockSpec((1, N_pad), lambda i, k: (0, 0)),      # bias
            pl.BlockSpec((tm, N_pad), lambda i, k: (i, 0)),     # residual tile
            pl.BlockSpec((1, N_pad), lambda i, k: (0, 0)),      # gamma
            pl.BlockSpec((1, N_pad), lambda i, k: (0, 0)),      # beta
        ]
        out_specs = pl.BlockSpec((tm, N_pad), lambda i, k: (i, 0))
        scratch_shapes = [pltpu.VMEM((tm, N_pad), jnp.float32)]
        dim_sem = ("parallel", "arbitrary")

    out2d = pl.pallas_call(
        kernel,
        out_shape=jax.ShapeDtypeStruct((M_pad, N_pad), orig_dtype),
        grid_spec=pltpu.PrefetchScalarGridSpec(
            num_scalar_prefetch=0,
            grid=grid,
            in_specs=in_specs,
            out_specs=out_specs,
            scratch_shapes=scratch_shapes,
        ),
        compiler_params=pltpu.CompilerParams(
            dimension_semantics=dim_sem,
            vmem_limit_bytes=vmem_limit),
        cost_estimate=cost,
    )(x2d, params["w"], params["b"], r2d, params["g"], params["beta"])

    return out2d[:M, :outsize].reshape(B, S, outsize)


def init_params(key, insize, outsize):
    # matches nn.Linear default init bounds, deterministic
    k_w, k_b = jax.random.split(key)
    bound = 1.0 / math.sqrt(insize)
    weight = jax.random.uniform(k_w, (outsize, insize), jnp.float32, -bound, bound)
    bias = jax.random.uniform(k_b, (outsize,), jnp.float32, -bound, bound)
    gamma = jnp.ones((outsize,), jnp.float32)   # LayerNorm.weight
    beta = jnp.zeros((outsize,), jnp.float32)   # LayerNorm.bias
    return weight, bias, gamma, beta


if __name__ == "__main__":
    B, S, insize, outsize = 2, 8, 32, 32
    key = jax.random.PRNGKey(0)
    k_h, k_r, k_p = jax.random.split(key, 3)

    hidden_states = jax.random.normal(k_h, (B, S, insize), jnp.float32)
    input_tensor = jax.random.normal(k_r, (B, S, outsize), jnp.float32)
    weight, bias, gamma, beta = init_params(k_p, insize, outsize)
    weight_t = weight.T  # [insize, outsize]

    params = prepare_self_output_params(weight_t, bias, gamma, beta)  # cache across calls
    out = transformer_self_output(hidden_states, input_tensor, params, eps=1e-5)
    out = jax.block_until_ready(out)

    # Reference in plain JAX (same bf16 matmul + f32 LayerNorm recipe as the kernel).
    h = jnp.dot(hidden_states.reshape(-1, insize).astype(jnp.bfloat16),
                weight_t.astype(jnp.bfloat16),
                preferred_element_type=jnp.float32).reshape(B, S, outsize)
    h = h + bias + input_tensor
    mu = h.mean(-1, keepdims=True)
    var = ((h - mu) ** 2).mean(-1, keepdims=True)
    ref = (h - mu) / jnp.sqrt(var + 1e-5) * gamma + beta

    err = float(jnp.abs(out - ref).max())
    assert err < 2e-2, err

    print("KERNEL_OK")
</pallas_src>

<mosaic_0001>
module attributes {stable_mosaic.version = 11 : i64} {
  func.func @self_output_kernel_single(%arg0: i32, %arg1: memref<16x32xf32, #tpu.memory_space<vmem>>, %arg2: memref<32x128xbf16, #tpu.memory_space<vmem>>, %arg3: memref<1x128xf32, #tpu.memory_space<vmem>>, %arg4: memref<16x128xf32, #tpu.memory_space<vmem>>, %arg5: memref<1x128xf32, #tpu.memory_space<vmem>>, %arg6: memref<1x128xf32, #tpu.memory_space<vmem>>, %arg7: memref<16x128xf32, #tpu.memory_space<vmem>>) attributes {dimension_semantics = [#tpu.dimension_semantics<parallel>], iteration_bounds = array<i64: 1>, scalar_prefetch = 0 : i64, scratch_operands = 0 : i64, tpu.core_type = #tpu.core_type<tc>, window_params = [{transform_indices = @transform_0, window_bounds = array<i64: 16, 32>}, {pipeline_mode = #tpu.pipeline_mode<synchronous>, transform_indices = @transform_1, window_bounds = array<i64: 32, 128>}, {pipeline_mode = #tpu.pipeline_mode<synchronous>, transform_indices = @transform_2, window_bounds = array<i64: 1, 128>}, {transform_indices = @transform_3, window_bounds = array<i64: 16, 128>}, {pipeline_mode = #tpu.pipeline_mode<synchronous>, transform_indices = @transform_4, window_bounds = array<i64: 1, 128>}, {pipeline_mode = #tpu.pipeline_mode<synchronous>, transform_indices = @transform_5, window_bounds = array<i64: 1, 128>}, {transform_indices = @transform_6, window_bounds = array<i64: 16, 128>}]} {
    %c0 = arith.constant 0 : index
    %c0_0 = arith.constant 0 : index
    %0 = vector.load %arg1[%c0, %c0_0] : memref<16x32xf32, #tpu.memory_space<vmem>>, vector<16x32xf32>
    %1 = arith.truncf %0 : vector<16x32xf32> to vector<16x32xbf16>
    %c0_1 = arith.constant 0 : index
    %c0_2 = arith.constant 0 : index
    %2 = vector.load %arg2[%c0_1, %c0_2] : memref<32x128xbf16, #tpu.memory_space<vmem>>, vector<32x128xbf16>
    %cst = arith.constant dense<0.000000e+00> : vector<16x128xf32>
    %3 = tpu.matmul %1, %2, %cst {dimension_numbers = #tpu.dot_dimension_numbers<[1], [0], [0], [1], [0, 0, 1, 1], [], []>} : vector<16x32xbf16>, vector<32x128xbf16>, vector<16x128xf32> -> vector<16x128xf32>
    %c0_3 = arith.constant 0 : index
    %c0_4 = arith.constant 0 : index
    %4 = vector.load %arg3[%c0_3, %c0_4] : memref<1x128xf32, #tpu.memory_space<vmem>>, vector<1x128xf32>
    %5 = vector.broadcast %4 : vector<1x128xf32> to vector<16x128xf32>
    %6 = arith.addf %3, %5 : vector<16x128xf32>
    %c0_5 = arith.constant 0 : index
    %c0_6 = arith.constant 0 : index
    %7 = vector.load %arg4[%c0_5, %c0_6] : memref<16x128xf32, #tpu.memory_space<vmem>>, vector<16x128xf32>
    %8 = arith.addf %6, %7 : vector<16x128xf32>
    %c0_7 = arith.constant 0 : index
    %c0_8 = arith.constant 0 : index
    %9 = vector.load %arg5[%c0_7, %c0_8] : memref<1x128xf32, #tpu.memory_space<vmem>>, vector<1x128xf32>
    %c0_9 = arith.constant 0 : index
    %c0_10 = arith.constant 0 : index
    %10 = vector.load %arg6[%c0_9, %c0_10] : memref<1x128xf32, #tpu.memory_space<vmem>>, vector<1x128xf32>
    %11 = tpu.iota {dimensions = array<i32: 1>} : vector<16x128xi32>
    %c32_i32 = arith.constant 32 : i32
    %12 = vector.broadcast %c32_i32 : i32 to vector<16x128xi32>
    %13 = arith.cmpi slt, %11, %12 : vector<16x128xi32>
    %cst_11 = arith.constant 0.000000e+00 : f32
    %14 = vector.broadcast %cst_11 : f32 to vector<16x128xf32>
    %15 = arith.select %13, %8, %14 : vector<16x128xi1>, vector<16x128xf32>
    %cst_12 = arith.constant dense<0.000000e+00> : vector<16xf32>
    %16 = vector.multi_reduction <add>, %15, %cst_12 [1] : vector<16x128xf32> to vector<16xf32>
    %17 = vector.shape_cast %16 : vector<16xf32> to vector<16x1xf32>
    %18 = arith.mulf %15, %15 : vector<16x128xf32>
    %cst_13 = arith.constant dense<0.000000e+00> : vector<16xf32>
    %19 = vector.multi_reduction <add>, %18, %cst_13 [1] : vector<16x128xf32> to vector<16xf32>
    %20 = vector.shape_cast %19 : vector<16xf32> to vector<16x1xf32>
    %cst_14 = arith.constant 3.125000e-02 : f32
    %21 = vector.broadcast %cst_14 : f32 to vector<16x1xf32>
    %22 = arith.mulf %17, %21 : vector<16x1xf32>
    %cst_15 = arith.constant 3.125000e-02 : f32
    %23 = vector.broadcast %cst_15 : f32 to vector<16x1xf32>
    %24 = arith.mulf %20, %23 : vector<16x1xf32>
    %25 = arith.mulf %22, %22 : vector<16x1xf32>
    %26 = arith.subf %24, %25 : vector<16x1xf32>
    %cst_16 = arith.constant 0.000000e+00 : f32
    %27 = vector.broadcast %cst_16 : f32 to vector<16x1xf32>
    %28 = arith.maximumf %26, %27 : vector<16x1xf32>
    %cst_17 = arith.constant 9.99999974E-6 : f32
    %29 = vector.broadcast %cst_17 : f32 to vector<16x1xf32>
    %30 = arith.addf %28, %29 : vector<16x1xf32>
    %31 = math.rsqrt %30 : vector<16x1xf32>
    %32 = vector.broadcast %9 : vector<1x128xf32> to vector<16x128xf32>
    %33 = vector.broadcast %31 : vector<16x1xf32> to vector<16x128xf32>
    %34 = arith.mulf %32, %33 : vector<16x128xf32>
    %35 = vector.broadcast %22 : vector<16x1xf32> to vector<16x128xf32>
    %36 = arith.subf %15, %35 : vector<16x128xf32>
    %37 = arith.mulf %36, %34 : vector<16x128xf32>
    %38 = vector.broadcast %10 : vector<1x128xf32> to vector<16x128xf32>
    %39 = arith.addf %37, %38 : vector<16x128xf32>
    %c0_18 = arith.constant 0 : index
    %c0_19 = arith.constant 0 : index
    %40 = vector.load %arg7[%c0_18, %c0_19] : memref<16x128xf32, #tpu.memory_space<vmem>>, vector<16x128xf32>
    tpu.vector_store %arg7[%c0_18, %c0_19], %39 {strides = array<i32>} : memref<16x128xf32, #tpu.memory_space<vmem>>, vector<16x128xf32>,
    return
  }
  func.func @transform_0(%arg0: i32) -> (i32, i32) {
    %c0_i32 = arith.constant 0 : i32
    %c0_i32_0 = arith.constant 0 : i32
    return %arg0, %c0_i32 : i32, i32
  }
  func.func @transform_1(%arg0: i32) -> (i32, i32) {
    %c0_i32 = arith.constant 0 : i32
    %c0_i32_0 = arith.constant 0 : i32
    %c0_i32_1 = arith.constant 0 : i32
    return %c0_i32, %c0_i32_0 : i32, i32
  }
  func.func @transform_2(%arg0: i32) -> (i32, i32) {
    %c0_i32 = arith.constant 0 : i32
    %c0_i32_0 = arith.constant 0 : i32
    %c0_i32_1 = arith.constant 0 : i32
    return %c0_i32, %c0_i32_0 : i32, i32
  }
  func.func @transform_3(%arg0: i32) -> (i32, i32) {
    %c0_i32 = arith.constant 0 : i32
    %c0_i32_0 = arith.constant 0 : i32
    return %arg0, %c0_i32 : i32, i32
  }
  func.func @transform_4(%arg0: i32) -> (i32, i32) {
    %c0_i32 = arith.constant 0 : i32
    %c0_i32_0 = arith.constant 0 : i32
    %c0_i32_1 = arith.constant 0 : i32
    return %c0_i32, %c0_i32_0 : i32, i32
  }
  func.func @transform_5(%arg0: i32) -> (i32, i32) {
    %c0_i32 = arith.constant 0 : i32
    %c0_i32_0 = arith.constant 0 : i32
    %c0_i32_1 = arith.constant 0 : i32
    return %c0_i32, %c0_i32_0 : i32, i32
  }
  func.func @transform_6(%arg0: i32) -> (i32, i32) {
    %c0_i32 = arith.constant 0 : i32
    %c0_i32_0 = arith.constant 0 : i32
    return %arg0, %c0_i32 : i32, i32
  }
}

</mosaic_0001>

<bundles_post_ra>
// kernel: tpu_custom_call.1
= control target key start
LH: loop header
LB: loop body
LE: loop exit
PB: predicated region body
PF: predicated region fallthrough
CT: control target
= control target key end

     0   :  { %11 = vsyncpa [#allocation3], 0  ;;  %s406_s0 = inlined_call_operand.hbm [shape: f32[16,32], index: 0, kind: input, shape index: {}]   ;;  %s407_s1 = inlined_call_operand.hbm [shape: bf16[32,128], index: 1, kind: input, shape index: {}]   ;;  %s408_s2 = inlined_call_operand.vmem [shape: f32[1,128], index: 2, kind: input, shape index: {}]   ;;  %s409_s3 = inlined_call_operand.hbm [shape: f32[16,128], index: 3, kind: input, shape index: {}]   ;;  %s410_s4 = inlined_call_operand.vmem [shape: f32[1,128], index: 4, kind: input, shape index: {}]   ;;  %s411_s5 = inlined_call_operand.vmem [shape: f32[1,128], index: 5, kind: input, shape index: {}]   ;;  %s412_s6 = inlined_call_operand.hbm [shape: f32[16,128], index: 6, kind: output, shape index: {}]  }
   0x1   :  { %12 = vsyncpa [#allocation6], 0 }
   0x2   :  { %13 = vsyncpa [#allocation4], 0  ;;  %s331_s21 = smov [#allocation5]  }
   0x3   :  { %s31_s22 = sshll.u32 %s331_s21, 4  ;;  %s32_s22 = int_to_ptr.vmem [resolvable:$true] %s31_s22 }
   0x4   :  { %s253_s23 = scalar_lea.vmem %s32_s22, 256  ;;  %p258_p1 = scmp.lt.s32.totalorder %s32_s22, %s32_s22 }
   0x5   :  { %p254_p0 = scmp.ne.s32.totalorder %s32_s22, %s253_s23  ;;  %p259_p2 = scmp.lt.s32.totalorder %s253_s23, %s253_s23 }
   0x7   :  { %p260_p3 = por %p259_p2, %p258_p1 }
   0x9   :  { %p261_p4 = pnand %p260_p3, %p254_p0 }
   0xb   :  { %264 = shalt.err (!%p261_p4)
}
   0xc   :  { %s332_s24 = smov 64   ;;  %s333_s25 = smov 4  }
   0xd   :  { %37 = dma.hbm_to_vmem [thread:$0]  %s407_s1, 256, %s32_s22, [#allocation6], %s332_s24, %s332_s24, %s333_s25  }
   0xe   :  { %s334_s28 = smov [#allocation2]  }
   0xf   :  { %s19_s29 = sshll.u32 %s334_s28, 4  ;;  %s20_s29 = int_to_ptr.vmem [resolvable:$true] %s19_s29 }
  0x10   :  { %s273_s30 = scalar_lea.vmem %s20_s29, 256  ;;  %p278_p6 = scmp.lt.s32.totalorder %s20_s29, %s20_s29 }
  0x11   :  { %p274_p5 = scmp.ne.s32.totalorder %s20_s29, %s273_s30  ;;  %p279_p7 = scmp.lt.s32.totalorder %s273_s30, %s273_s30 }
  0x13   :  { %p280_p8 = por %p279_p7, %p278_p6 }
  0x15   :  { %p281_p9 = pnand %p280_p8, %p274_p5 }
  0x17   :  { %284 = shalt.err (!%p281_p9)
}
  0x18   :  { %s335_s7 = smov 128   ;;  %s336_s8 = smov 8  }
  0x19   :  { %25 = dma.hbm_to_vmem [thread:$0]  %s406_s0, 256, %s20_s29, [#allocation3], %s335_s7, %s335_s7, %s336_s8  }
  0x1a   :  { %s337_s1 = smov [#allocation7]  }
  0x1b   :  { %s45_s11 = sshll.u32 %s337_s1, 4  ;;  %s46_s11 = int_to_ptr.vmem [resolvable:$true] %s45_s11 }
  0x1c   :  { %s293_s12 = scalar_lea.vmem %s46_s11, 256  ;;  %p298_p11 = scmp.lt.s32.totalorder %s46_s11, %s46_s11 }
  0x1d   :  { %p294_p10 = scmp.ne.s32.totalorder %s46_s11, %s293_s12  ;;  %p299_p12 = scmp.lt.s32.totalorder %s293_s12, %s293_s12 }
  0x1f   :  { %p300_p13 = por %p299_p12, %p298_p11 }
  0x21   :  { %p301_p0 = pnand %p300_p13, %p294_p10 }
  0x23   :  { %304 = shalt.err (!%p301_p0)
}
  0x24   :  { %51 = dma.hbm_to_vmem [thread:$0]  %s409_s3, 256, %s46_s11, [#allocation6], %s335_s7, %s335_s7, %s336_s8  }
  0x25   :  { %325 = dma.done.wait [#allocation3], 256  }
  0x26   :  { %326 = vsyncadd [#allocation3], 4294967040 }
  0x27   :  { %327 = dma.done.wait [#allocation6], 512  }
  0x28   :  { %328 = vsyncadd [#allocation6], 4294966784  ;;  %v338_v0 = vmov 0.0   ;;  %vm339_vm0 = vmmov 0   ;;  %v239_v1 = vld [vmem:[#allocation5 + $0x8] sm:$0xff]   ;;  %v240_v2 = vld [vmem:[#allocation5] sm:$0xff]   ;;  %v143_v6 = vlaneseq }
  0x29   :  { %221 = vmatprep.subr.bf16.mxu0 %v338_v0  ;;  %225 = vmatprep.mubr.msk.bf16.mxu0 %vm339_vm0, %v338_v0  ;;  %v66_v3 = vld [vmem:[#allocation2] sm:$0xff]  ;;  %v67_v4 = vld [vmem:[#allocation2 + $0x8] sm:$0xff]  ;;  %vm92_vm1 = vcmask 261120   ;;  %s340_s18 = smov [#allocation8]  }
  0x2a   :  { %222 = vmatpush3.bf16.msra.mxu0 %v239_v1  ;;  %v68_v5 = vpack.c.bf16 %v67_v4, %v66_v3  ;;  %v212_v7 = vld [vmem:[%s408_s2] ss:$0 sm:$0xff]  ;;  %v144_v8 = vand.u32 127, %v143_v6  ;;  %v138_v15 = vld [vmem:[#allocation7 + $0x8] sm:$0xff]  ;;  %s199_s19 = sshll.u32 %s340_s18, 4  ;;  %s200_s19 = int_to_ptr.vmem [resolvable:$true] %s199_s19 }
  0x2b   :  { %223 = vmatprep.subr.bf16.mxu0 %v338_v0  ;;  %v137_v10 = vld [vmem:[#allocation7] sm:$0xff]  ;;  %p310_p2 = scmp.lt.s32.totalorder %s200_s19, %s200_s19 }
  0x2c   :  { %vm145_vm2 = vcmp.lt.s32.totalorder %v144_v8, 32  ;;  %v216_v39 = vld [vmem:[%s410_s4] ss:$0 sm:$0xff]  ;;  %s305_s4 = scalar_lea.vmem %s200_s19, 256 }
  0x2d   :  { %v217_v43 = vld [vmem:[%s411_s5] ss:$0 sm:$0xff]  ;;  %p306_p1 = scmp.ne.s32.totalorder %s200_s19, %s305_s4  ;;  %p311_p3 = scmp.lt.s32.totalorder %s305_s4, %s305_s4 }
  0x2e   :  { %224 = vmatpush3.bf16.msra.mxu0 %v240_v2 }
  0x2f   :  { %p312_p4 = por %p311_p3, %p310_p2 }
  0x31   :  { %226 = vmatmul.mubr.msk.bf16.vlgmr.msra.gmra.mxu0 %vm92_vm1, %v68_v5  ;;  %p313_p5 = pnand %p312_p4, %p306_p1 }
  0xf1   :  { %v130_v9 = vpop.f32.mrf.mxu0 }
  0xf2   :  { %v131_v11 = vadd.f32 %v212_v7, %v130_v9 }
  0xf3   :  { %v227_v12 = vpop.f32.mrf.mxu0 }
  0xf4   :  { %v139_v13 = vadd.f32 %v137_v10, %v131_v11 }
  0xf5   :  { %v133_v14 = vpop.f32.mrf.mxu0 }
  0xf6   :  { %v134_v16 = vadd.f32 %v212_v7, %v133_v14  ;;  %v146_v17 = vsel %vm145_vm2, %v139_v13, 0.0 }
  0xf7   :  { %148 = vadd.xlane.f32.xlu0 %v146_v17  ;;  %v228_v18 = vpop.f32.mrf.mxu0  ;;  %v152_v19 = vmul.f32 %v146_v17, %v146_v17 }
  0xf8   :  { %v140_v20 = vadd.f32 %v138_v15, %v134_v16 }
  0xf9   :  { %154 = vadd.xlane.f32.xlu1 %v152_v19 }
  0xfa   :  { %v147_v21 = vsel %vm145_vm2, %v140_v20, 0.0 }
  0xfb   :  { %150 = vadd.xlane.f32.xlu0 %v147_v21  ;;  %v153_v22 = vmul.f32 %v147_v21, %v147_v21 }
  0xfd   :  { %156 = vadd.xlane.f32.xlu1 %v153_v22 }
 0x180   :  { %v149_v23 = vpop.xlane.xlu0 %148 }
 0x181   :  { %v158_v24 = vmul.f32 0.03125, %v149_v23 }
 0x182   :  { %v155_v25 = vpop.xlane.xlu1 %154 }
 0x183   :  { %v162_v26 = vmul.f32 %v158_v24, %v158_v24  ;;  %v160_v27 = vmul.f32 0.03125, %v155_v25  ;;  %v180_v41 = vsub.f32 %v146_v17, %v158_v24 }
 0x184   :  { %v151_v28 = vpop.xlane.xlu0 %150 }
 0x185   :  { %v164_v29 = vsub.f32 %v160_v27, %v162_v26  ;;  %v159_v30 = vmul.f32 0.03125, %v151_v28 }
 0x186   :  { %v157_v31 = vpop.xlane.xlu1 %156 }
 0x187   :  { %v166_v32 = vmax.f32 %v164_v29, 0.0  ;;  %v163_v33 = vmul.f32 %v159_v30, %v159_v30  ;;  %v161_v34 = vmul.f32 0.03125, %v157_v31  ;;  %v181_v46 = vsub.f32 %v147_v21, %v159_v30 }
 0x189   :  { %v168_v35 = vadd.f32 1e-05, %v166_v32  ;;  %v165_v36 = vsub.f32 %v161_v34, %v163_v33 }
 0x18b   :  { %241 = vrsqrt.f32 %v168_v35  ;;  %v167_v37 = vmax.f32 %v165_v36, 0.0 }
 0x18d   :  { %v169_v38 = vadd.f32 1e-05, %v167_v37 }
 0x18f   :  { %243 = vrsqrt.f32 %v169_v38 }
 0x198   :  { %v242_v40 = vpop.eup %241 }
 0x199   :  { %v178_v42 = vmul.f32 %v242_v40, %v216_v39 }
 0x19b   :  { %v182_v44 = vmul.f32 %v180_v41, %v178_v42 }
 0x19c   :  { %v244_v45 = vpop.eup %243 }
 0x19d   :  { %v179_v47 = vmul.f32 %v244_v45, %v216_v39  ;;  %v190_v48 = vadd.f32 %v217_v43, %v182_v44 }
 0x19f   :  { %v183_v49 = vmul.f32 %v181_v46, %v179_v47  ;;  %192 = vst [vmem:[#allocation8] sm:$0xff] %v190_v48 }
 0x1a1   :  { %v191_v50 = vadd.f32 %v217_v43, %v183_v49 }
 0x1a3   :  { %193 = vst [vmem:[#allocation8 + $0x8] sm:$0xff] %v191_v50 }
 0x1a4   :  { %316 = shalt.err (!%p313_p5)
}
 0x1a5   :  { %205 = dma.vmem_to_hbm [thread:$0]  %s200_s19, 256, %s412_s6, [#allocation4], %s335_s7, %s335_s7, %s336_s8  }
 0x1a6   :  { %329 = dma.done.wait [#allocation4], 256  }
 0x1a7   :  { %330 = vsyncadd [#allocation4], 4294967040 }
 0x1a8   :  { %209 = vsyncpa [#allocation3], 1 }
 0x1a9   :  { %210 = vsyncpa [#allocation6], 1 }
 0x1aa   :  { %211 = vsyncpa [#allocation4], 1 }

</bundles_post_ra>
